<compile_context>
chip_gen: v6e
topology: v6e:2x2x1
jax: 0.10.0
libtpu: 0.0.40
codegen_flags: <defaults>
</compile_context>

<pallas_src>
import math
import jax
import jax.numpy as jnp
from jax import lax
from jax.experimental import pallas as pl
from jax.experimental.pallas import tpu as pltpu


# -----------------------------------------------------------------------------
# Pallas kernel: whole-sequence LSTM recurrence + deferred output projection
# -----------------------------------------------------------------------------
def lstm_fc_kernel(x_ref, wih_ref, whh_ref, b_ref, wfc_ref, bfc_ref,
                   logits_ref, h_out_ref, c_out_ref,
                   gx_sc, h_all_sc):
    TB, _ = x_ref.shape
    B, H = h_out_ref.shape
    T = TB // B

    # Hoisted input projection for all timesteps: one MXU matmul + bias.
    gx_sc[...] = (jnp.dot(x_ref[...], wih_ref[...],
                          preferred_element_type=jnp.float32)
                  + b_ref[...])                                  # (T*B, 4H)

    w_hh = whh_ref[...]                                          # (H, 4H)

    def step(t, carry):
        h_prev, c_prev = carry
        row = t * B
        gates = (gx_sc[pl.ds(row, B), :]
                 + jnp.dot(h_prev, w_hh, preferred_element_type=jnp.float32))
        # One sigmoid + one tanh over the packed (B, 4H) gates, then slice.
        # PyTorch LSTM gate order: input, forget, cell(g), output.
        sg = jax.nn.sigmoid(gates)
        th = jnp.tanh(gates)
        i_g = sg[:, 0 * H:1 * H]
        f_g = sg[:, 1 * H:2 * H]
        g_g = th[:, 2 * H:3 * H]
        o_g = sg[:, 3 * H:4 * H]

        c_t = f_g * c_prev + i_g * g_g
        h_t = o_g * jnp.tanh(c_t)

        h_all_sc[pl.ds(row, B), :] = h_t
        return (h_t, c_t)

    h0 = jnp.zeros((B, H), jnp.float32)
    c0 = jnp.zeros((B, H), jnp.float32)
    h_n, c_n = lax.fori_loop(0, T, step, (h0, c0), unroll=True)

    # Final states: written once, after the loop.
    h_out_ref[...] = h_n
    c_out_ref[...] = c_n

    # Deferred output projection: one MXU matmul + one contiguous store.
    logits_ref[...] = (jnp.dot(h_all_sc[...], wfc_ref[...],
                               preferred_element_type=jnp.float32)
                       + bfc_ref[...])                           # (T*B, V)


def lstm_fc_pallas(x_flat, w_ih, w_hh, b, w_fc, b_fc, *, batch):
    """x_flat: (T*B, E) f32, time-major-then-batch row order.
    Returns logits_flat (T*B, V), h_n (B, H), c_n (B, H)."""
    TB, E = x_flat.shape
    B = batch
    H = w_hh.shape[0]
    V = w_fc.shape[1]

    grid_spec = pltpu.PrefetchScalarGridSpec(
        num_scalar_prefetch=0,
        grid=(1,),                                               # single invocation
        in_specs=[
            pl.BlockSpec((TB, E), lambda i: (0, 0)),             # x (all timesteps)
            pl.BlockSpec((E, 4 * H), lambda i: (0, 0)),          # W_ih (transposed)
            pl.BlockSpec((H, 4 * H), lambda i: (0, 0)),          # W_hh (transposed)
            pl.BlockSpec((1, 4 * H), lambda i: (0, 0)),          # b_ih + b_hh
            pl.BlockSpec((H, V), lambda i: (0, 0)),              # W_fc (transposed)
            pl.BlockSpec((1, V), lambda i: (0, 0)),              # b_fc
        ],
        out_specs=[
            pl.BlockSpec((TB, V), lambda i: (0, 0)),             # logits (all steps)
            pl.BlockSpec((B, H), lambda i: (0, 0)),              # h_n
            pl.BlockSpec((B, H), lambda i: (0, 0)),              # c_n
        ],
        scratch_shapes=[
            pltpu.VMEM((TB, 4 * H), jnp.float32),                # hoisted x-gates
            pltpu.VMEM((TB, H), jnp.float32),                    # all hidden states
        ],
    )

    return pl.pallas_call(
        lstm_fc_kernel,
        grid_spec=grid_spec,
        out_shape=(
            jax.ShapeDtypeStruct((TB, V), jnp.float32),
            jax.ShapeDtypeStruct((B, H), jnp.float32),
            jax.ShapeDtypeStruct((B, H), jnp.float32),
        ),
        compiler_params=pltpu.CompilerParams(
            dimension_semantics=("arbitrary",)),                 # sequential recurrence
    )(x_flat, w_ih, w_hh, b, w_fc, b_fc)


# -----------------------------------------------------------------------------
# Model: parameters, glue, forward
# -----------------------------------------------------------------------------
def make_sinusoidal_pe(max_seq_len, embedding_dim):
    pe = jnp.zeros((max_seq_len, embedding_dim), jnp.float32)
    position = jnp.arange(max_seq_len, dtype=jnp.float32)[:, None]
    div_term = jnp.exp(jnp.arange(0, embedding_dim, 2, dtype=jnp.float32)
                       * (-math.log(10000.0) / embedding_dim))
    pe = pe.at[:, 0::2].set(jnp.sin(position * div_term))
    pe = pe.at[:, 1::2].set(jnp.cos(position * div_term))
    return pe  # (max_seq_len, E)


def init_params(key, vocab_size, embedding_dim, hidden_dim):
    ks = jax.random.split(key, 5)

    def xavier(k, shape):
        fan_in, fan_out = shape[1], shape[0]
        bound = math.sqrt(6.0 / (fan_in + fan_out))
        return jax.random.uniform(k, shape, jnp.float32, -bound, bound)

    emb = xavier(ks[0], (vocab_size, embedding_dim))
    # LSTM weights stored pre-transposed for right-multiplication in-kernel:
    # PyTorch weight_ih_l0: (4H, E) -> here (E, 4H); weight_hh_l0: (4H, H) -> (H, 4H)
    w_ih = xavier(ks[1], (4 * hidden_dim, embedding_dim)).T
    w_hh = xavier(ks[2], (4 * hidden_dim, hidden_dim)).T
    # biases: zeros, forget-gate chunk of each bias = 1.0 -> combined bias = 2.0 there
    b_single = jnp.zeros((4 * hidden_dim,), jnp.float32)
    b_single = b_single.at[hidden_dim:2 * hidden_dim].set(1.0)
    b = (b_single + b_single)[None, :]                     # b_ih + b_hh, (1, 4H)
    # fc: PyTorch (V, H) -> here (H, V)
    w_fc = xavier(ks[3], (vocab_size, hidden_dim)).T
    b_fc = jax.random.uniform(ks[4], (1, vocab_size), jnp.float32, -0.1, 0.1)
    return dict(emb=emb, w_ih=w_ih, w_hh=w_hh, b=b, w_fc=w_fc, b_fc=b_fc)


def altlas_rnn_forward(params, input_seq, pe):
    """input_seq: (B, T) int32 token ids. Returns (logits (B,T,V), (h_n, c_n))."""
    B, T = input_seq.shape
    V = params["w_fc"].shape[1]
    # Embedding gather directly in time-major order + sinusoidal PE (JAX glue).
    tokens_tb = jnp.transpose(input_seq, (1, 0))            # (T, B)
    x_tbe = params["emb"][tokens_tb] + pe[:T, None, :]      # (T, B, E)
    x_flat = x_tbe.reshape(T * B, -1)                       # (T*B, E)
    logits_flat, h_n, c_n = lstm_fc_pallas(
        x_flat, params["w_ih"], params["w_hh"], params["b"],
        params["w_fc"], params["b_fc"], batch=B)
    logits = jnp.transpose(logits_flat.reshape(T, B, V), (1, 0, 2))   # (B, T, V)
    return logits, (h_n[None], c_n[None])                   # num_layers=1 leading axis


# -----------------------------------------------------------------------------
# Pure-JAX reference (for correctness check)
# -----------------------------------------------------------------------------
def reference_forward(params, input_seq, pe, hidden_dim):
    B, T = input_seq.shape
    H = hidden_dim
    embedded = params["emb"][input_seq] + pe[None, :T, :]
    x_tbe = jnp.transpose(embedded, (1, 0, 2))

    def step(carry, x_t):
        h, c = carry
        gates = x_t @ params["w_ih"] + h @ params["w_hh"] + params["b"][0]
        i = jax.nn.sigmoid(gates[:, :H])
        f = jax.nn.sigmoid(gates[:, H:2 * H])
        g = jnp.tanh(gates[:, 2 * H:3 * H])
        o = jax.nn.sigmoid(gates[:, 3 * H:])
        c = f * c + i * g
        h = o * jnp.tanh(c)
        return (h, c), h @ params["w_fc"] + params["b_fc"][0]

    h0 = jnp.zeros((B, H), jnp.float32)
    c0 = jnp.zeros((B, H), jnp.float32)
    (h_n, c_n), logits_tbv = lax.scan(step, (h0, c0), x_tbe)
    return jnp.transpose(logits_tbv, (1, 0, 2)), (h_n[None], c_n[None])


if __name__ == "__main__":
    vocab_size = 64
    embedding_dim = 16
    hidden_dim = 32        # < 128 -> attention / layernorm auto-disabled
    max_seq_len = 512      # > 16  -> sinusoidal positional encoding
    B, T = 2, 8

    key = jax.random.PRNGKey(0)
    kp, kx = jax.random.split(key)
    params = init_params(kp, vocab_size, embedding_dim, hidden_dim)
    pe = make_sinusoidal_pe(max_seq_len, embedding_dim)
    input_seq = jax.random.randint(kx, (B, T), 1, vocab_size, dtype=jnp.int32)

    logits, (h_n, c_n) = altlas_rnn_forward(params, input_seq, pe)
    logits = jax.block_until_ready(logits)
    h_n = jax.block_until_ready(h_n)
    c_n = jax.block_until_ready(c_n)

    # sanity: shapes
    assert logits.shape == (B, T, vocab_size)
    assert h_n.shape == (1, B, hidden_dim) and c_n.shape == (1, B, hidden_dim)

    # correctness vs pure-JAX reference
    ref_logits, (ref_h, ref_c) = reference_forward(params, input_seq, pe, hidden_dim)
    assert jnp.allclose(logits, ref_logits, atol=1e-4, rtol=1e-4)
    assert jnp.allclose(h_n, ref_h, atol=1e-5, rtol=1e-4)
    assert jnp.allclose(c_n, ref_c, atol=1e-5, rtol=1e-4)

    print("KERNEL_OK")
</pallas_src>

<mosaic_0001>
module attributes {stable_mosaic.version = 11 : i64} {
  func.func @lstm_fc_kernel(%arg0: i32, %arg1: memref<16x16xf32, #tpu.memory_space<vmem>>, %arg2: memref<16x128xf32, #tpu.memory_space<vmem>>, %arg3: memref<32x128xf32, #tpu.memory_space<vmem>>, %arg4: memref<1x128xf32, #tpu.memory_space<vmem>>, %arg5: memref<32x64xf32, #tpu.memory_space<vmem>>, %arg6: memref<1x64xf32, #tpu.memory_space<vmem>>, %arg7: memref<16x64xf32, #tpu.memory_space<vmem>>, %arg8: memref<2x32xf32, #tpu.memory_space<vmem>>, %arg9: memref<2x32xf32, #tpu.memory_space<vmem>>, %arg10: memref<16x128xf32, #tpu.memory_space<vmem>>, %arg11: memref<16x32xf32, #tpu.memory_space<vmem>>) attributes {dimension_semantics = [#tpu.dimension_semantics<arbitrary>], iteration_bounds = array<i64: 1>, scalar_prefetch = 0 : i64, scratch_operands = 2 : i64, tpu.core_type = #tpu.core_type<tc>, window_params = [{pipeline_mode = #tpu.pipeline_mode<synchronous>, transform_indices = @transform_0, window_bounds = array<i64: 16, 16>}, {pipeline_mode = #tpu.pipeline_mode<synchronous>, transform_indices = @transform_1, window_bounds = array<i64: 16, 128>}, {pipeline_mode = #tpu.pipeline_mode<synchronous>, transform_indices = @transform_2, window_bounds = array<i64: 32, 128>}, {pipeline_mode = #tpu.pipeline_mode<synchronous>, transform_indices = @transform_3, window_bounds = array<i64: 1, 128>}, {pipeline_mode = #tpu.pipeline_mode<synchronous>, transform_indices = @transform_4, window_bounds = array<i64: 32, 64>}, {pipeline_mode = #tpu.pipeline_mode<synchronous>, transform_indices = @transform_5, window_bounds = array<i64: 1, 64>}, {pipeline_mode = #tpu.pipeline_mode<synchronous>, transform_indices = @transform_6, window_bounds = array<i64: 16, 64>}, {pipeline_mode = #tpu.pipeline_mode<synchronous>, transform_indices = @transform_7, window_bounds = array<i64: 2, 32>}, {pipeline_mode = #tpu.pipeline_mode<synchronous>, transform_indices = @transform_8, window_bounds = array<i64: 2, 32>}]} {
    %c0 = arith.constant 0 : index
    %c0_0 = arith.constant 0 : index
    %0 = vector.load %arg1[%c0, %c0_0] : memref<16x16xf32, #tpu.memory_space<vmem>>, vector<16x16xf32>
    %c0_1 = arith.constant 0 : index
    %c0_2 = arith.constant 0 : index
    %1 = vector.load %arg2[%c0_1, %c0_2] : memref<16x128xf32, #tpu.memory_space<vmem>>, vector<16x128xf32>
    %cst = arith.constant dense<0.000000e+00> : vector<16x128xf32>
    %2 = tpu.matmul %0, %1, %cst {dimension_numbers = #tpu.dot_dimension_numbers<[1], [0], [0], [1], [0, 0, 1, 1], [], []>} : vector<16x16xf32>, vector<16x128xf32>, vector<16x128xf32> -> vector<16x128xf32>
    %c0_3 = arith.constant 0 : index
    %c0_4 = arith.constant 0 : index
    %3 = vector.load %arg4[%c0_3, %c0_4] : memref<1x128xf32, #tpu.memory_space<vmem>>, vector<1x128xf32>
    %4 = vector.broadcast %3 : vector<1x128xf32> to vector<16x128xf32>
    %5 = arith.addf %2, %4 : vector<16x128xf32>
    %c0_5 = arith.constant 0 : index
    %c0_6 = arith.constant 0 : index
    %6 = vector.load %arg10[%c0_5, %c0_6] : memref<16x128xf32, #tpu.memory_space<vmem>>, vector<16x128xf32>
    tpu.vector_store %arg10[%c0_5, %c0_6], %5 {strides = array<i32>} : memref<16x128xf32, #tpu.memory_space<vmem>>, vector<16x128xf32>,
    %c0_7 = arith.constant 0 : index
    %c0_8 = arith.constant 0 : index
    %7 = vector.load %arg3[%c0_7, %c0_8] : memref<32x128xf32, #tpu.memory_space<vmem>>, vector<32x128xf32>
    %cst_9 = arith.constant 0.000000e+00 : f32
    %8 = vector.broadcast %cst_9 : f32 to vector<2x32xf32>
    %cst_10 = arith.constant 0.000000e+00 : f32
    %9 = vector.broadcast %cst_10 : f32 to vector<2x32xf32>
    %c0_i32 = arith.constant 0 : i32
    %c2_i32 = arith.constant 2 : i32
    %10 = arith.muli %c0_i32, %c2_i32 : i32
    %11 = arith.index_cast %10 : i32 to index
    %c0_11 = arith.constant 0 : index
    %12 = vector.load %arg10[%11, %c0_11] : memref<16x128xf32, #tpu.memory_space<vmem>>, vector<2x128xf32>
    %cst_12 = arith.constant dense<0.000000e+00> : vector<2x128xf32>
    %13 = tpu.matmul %8, %7, %cst_12 {dimension_numbers = #tpu.dot_dimension_numbers<[1], [0], [0], [1], [0, 0, 1, 1], [], []>} : vector<2x32xf32>, vector<32x128xf32>, vector<2x128xf32> -> vector<2x128xf32>
    %14 = arith.addf %12, %13 : vector<2x128xf32>
    %15 = arith.negf %14 : vector<2x128xf32>
    %16 = math.exp %15 : vector<2x128xf32>
    %cst_13 = arith.constant 1.000000e+00 : f32
    %17 = vector.broadcast %cst_13 : f32 to vector<2x128xf32>
    %18 = arith.addf %17, %16 : vector<2x128xf32>
    %19 = arith.divf %17, %18 : vector<2x128xf32>
    %20 = math.tanh %14 : vector<2x128xf32>
    %21 = vector.extract_strided_slice %19 {offsets = [0, 0], sizes = [2, 32], strides = [1, 1]} : vector<2x128xf32> to vector<2x32xf32>
    %22 = vector.extract_strided_slice %19 {offsets = [0, 32], sizes = [2, 32], strides = [1, 1]} : vector<2x128xf32> to vector<2x32xf32>
    %23 = vector.extract_strided_slice %20 {offsets = [0, 64], sizes = [2, 32], strides = [1, 1]} : vector<2x128xf32> to vector<2x32xf32>
    %24 = vector.extract_strided_slice %19 {offsets = [0, 96], sizes = [2, 32], strides = [1, 1]} : vector<2x128xf32> to vector<2x32xf32>
    %25 = arith.mulf %22, %9 : vector<2x32xf32>
    %26 = arith.mulf %21, %23 : vector<2x32xf32>
    %27 = arith.addf %25, %26 : vector<2x32xf32>
    %28 = math.tanh %27 : vector<2x32xf32>
    %29 = arith.mulf %24, %28 : vector<2x32xf32>
    %30 = arith.index_cast %10 : i32 to index
    %c0_14 = arith.constant 0 : index
    %31 = vector.load %arg11[%30, %c0_14] : memref<16x32xf32, #tpu.memory_space<vmem>>, vector<2x32xf32>
    tpu.vector_store %arg11[%30, %c0_14], %29 {strides = array<i32>} : memref<16x32xf32, #tpu.memory_space<vmem>>, vector<2x32xf32>,
    %c1_i32 = arith.constant 1 : i32
    %c2_i32_15 = arith.constant 2 : i32
    %32 = arith.muli %c1_i32, %c2_i32_15 : i32
    %33 = arith.index_cast %32 : i32 to index
    %c0_16 = arith.constant 0 : index
    %34 = vector.load %arg10[%33, %c0_16] : memref<16x128xf32, #tpu.memory_space<vmem>>, vector<2x128xf32>
    %cst_17 = arith.constant dense<0.000000e+00> : vector<2x128xf32>
    %35 = tpu.matmul %29, %7, %cst_17 {dimension_numbers = #tpu.dot_dimension_numbers<[1], [0], [0], [1], [0, 0, 1, 1], [], []>} : vector<2x32xf32>, vector<32x128xf32>, vector<2x128xf32> -> vector<2x128xf32>
    %36 = arith.addf %34, %35 : vector<2x128xf32>
    %37 = arith.negf %36 : vector<2x128xf32>
    %38 = math.exp %37 : vector<2x128xf32>
    %cst_18 = arith.constant 1.000000e+00 : f32
    %39 = vector.broadcast %cst_18 : f32 to vector<2x128xf32>
    %40 = arith.addf %39, %38 : vector<2x128xf32>
    %41 = arith.divf %39, %40 : vector<2x128xf32>
    %42 = math.tanh %36 : vector<2x128xf32>
    %43 = vector.extract_strided_slice %41 {offsets = [0, 0], sizes = [2, 32], strides = [1, 1]} : vector<2x128xf32> to vector<2x32xf32>
    %44 = vector.extract_strided_slice %41 {offsets = [0, 32], sizes = [2, 32], strides = [1, 1]} : vector<2x128xf32> to vector<2x32xf32>
    %45 = vector.extract_strided_slice %42 {offsets = [0, 64], sizes = [2, 32], strides = [1, 1]} : vector<2x128xf32> to vector<2x32xf32>
    %46 = vector.extract_strided_slice %41 {offsets = [0, 96], sizes = [2, 32], strides = [1, 1]} : vector<2x128xf32> to vector<2x32xf32>
    %47 = arith.mulf %44, %27 : vector<2x32xf32>
    %48 = arith.mulf %43, %45 : vector<2x32xf32>
    %49 = arith.addf %47, %48 : vector<2x32xf32>
    %50 = math.tanh %49 : vector<2x32xf32>
    %51 = arith.mulf %46, %50 : vector<2x32xf32>
    %52 = arith.index_cast %32 : i32 to index
    %c0_19 = arith.constant 0 : index
    %53 = vector.load %arg11[%52, %c0_19] : memref<16x32xf32, #tpu.memory_space<vmem>>, vector<2x32xf32>
    tpu.vector_store %arg11[%52, %c0_19], %51 {strides = array<i32>} : memref<16x32xf32, #tpu.memory_space<vmem>>, vector<2x32xf32>,
    %c2_i32_20 = arith.constant 2 : i32
    %c2_i32_21 = arith.constant 2 : i32
    %54 = arith.muli %c2_i32_20, %c2_i32_21 : i32
    %55 = arith.index_cast %54 : i32 to index
    %c0_22 = arith.constant 0 : index
    %56 = vector.load %arg10[%55, %c0_22] : memref<16x128xf32, #tpu.memory_space<vmem>>, vector<2x128xf32>
    %cst_23 = arith.constant dense<0.000000e+00> : vector<2x128xf32>
    %57 = tpu.matmul %51, %7, %cst_23 {dimension_numbers = #tpu.dot_dimension_numbers<[1], [0], [0], [1], [0, 0, 1, 1], [], []>} : vector<2x32xf32>, vector<32x128xf32>, vector<2x128xf32> -> vector<2x128xf32>
    %58 = arith.addf %56, %57 : vector<2x128xf32>
    %59 = arith.negf %58 : vector<2x128xf32>
    %60 = math.exp %59 : vector<2x128xf32>
    %cst_24 = arith.constant 1.000000e+00 : f32
    %61 = vector.broadcast %cst_24 : f32 to vector<2x128xf32>
    %62 = arith.addf %61, %60 : vector<2x128xf32>
    %63 = arith.divf %61, %62 : vector<2x128xf32>
    %64 = math.tanh %58 : vector<2x128xf32>
    %65 = vector.extract_strided_slice %63 {offsets = [0, 0], sizes = [2, 32], strides = [1, 1]} : vector<2x128xf32> to vector<2x32xf32>
    %66 = vector.extract_strided_slice %63 {offsets = [0, 32], sizes = [2, 32], strides = [1, 1]} : vector<2x128xf32> to vector<2x32xf32>
    %67 = vector.extract_strided_slice %64 {offsets = [0, 64], sizes = [2, 32], strides = [1, 1]} : vector<2x128xf32> to vector<2x32xf32>
    %68 = vector.extract_strided_slice %63 {offsets = [0, 96], sizes = [2, 32], strides = [1, 1]} : vector<2x128xf32> to vector<2x32xf32>
    %69 = arith.mulf %66, %49 : vector<2x32xf32>
    %70 = arith.mulf %65, %67 : vector<2x32xf32>
    %71 = arith.addf %69, %70 : vector<2x32xf32>
    %72 = math.tanh %71 : vector<2x32xf32>
    %73 = arith.mulf %68, %72 : vector<2x32xf32>
    %74 = arith.index_cast %54 : i32 to index
    %c0_25 = arith.constant 0 : index
    %75 = vector.load %arg11[%74, %c0_25] : memref<16x32xf32, #tpu.memory_space<vmem>>, vector<2x32xf32>
    tpu.vector_store %arg11[%74, %c0_25], %73 {strides = array<i32>} : memref<16x32xf32, #tpu.memory_space<vmem>>, vector<2x32xf32>,
    %c3_i32 = arith.constant 3 : i32
    %c2_i32_26 = arith.constant 2 : i32
    %76 = arith.muli %c3_i32, %c2_i32_26 : i32
    %77 = arith.index_cast %76 : i32 to index
    %c0_27 = arith.constant 0 : index
    %78 = vector.load %arg10[%77, %c0_27] : memref<16x128xf32, #tpu.memory_space<vmem>>, vector<2x128xf32>
    %cst_28 = arith.constant dense<0.000000e+00> : vector<2x128xf32>
    %79 = tpu.matmul %73, %7, %cst_28 {dimension_numbers = #tpu.dot_dimension_numbers<[1], [0], [0], [1], [0, 0, 1, 1], [], []>} : vector<2x32xf32>, vector<32x128xf32>, vector<2x128xf32> -> vector<2x128xf32>
    %80 = arith.addf %78, %79 : vector<2x128xf32>
    %81 = arith.negf %80 : vector<2x128xf32>
    %82 = math.exp %81 : vector<2x128xf32>
    %cst_29 = arith.constant 1.000000e+00 : f32
    %83 = vector.broadcast %cst_29 : f32 to vector<2x128xf32>
    %84 = arith.addf %83, %82 : vector<2x128xf32>
    %85 = arith.divf %83, %84 : vector<2x128xf32>
    %86 = math.tanh %80 : vector<2x128xf32>
    %87 = vector.extract_strided_slice %85 {offsets = [0, 0], sizes = [2, 32], strides = [1, 1]} : vector<2x128xf32> to vector<2x32xf32>
    %88 = vector.extract_strided_slice %85 {offsets = [0, 32], sizes = [2, 32], strides = [1, 1]} : vector<2x128xf32> to vector<2x32xf32>
    %89 = vector.extract_strided_slice %86 {offsets = [0, 64], sizes = [2, 32], strides = [1, 1]} : vector<2x128xf32> to vector<2x32xf32>
    %90 = vector.extract_strided_slice %85 {offsets = [0, 96], sizes = [2, 32], strides = [1, 1]} : vector<2x128xf32> to vector<2x32xf32>
    %91 = arith.mulf %88, %71 : vector<2x32xf32>
    %92 = arith.mulf %87, %89 : vector<2x32xf32>
    %93 = arith.addf %91, %92 : vector<2x32xf32>
    %94 = math.tanh %93 : vector<2x32xf32>
    %95 = arith.mulf %90, %94 : vector<2x32xf32>
    %96 = arith.index_cast %76 : i32 to index
    %c0_30 = arith.constant 0 : index
    %97 = vector.load %arg11[%96, %c0_30] : memref<16x32xf32, #tpu.memory_space<vmem>>, vector<2x32xf32>
    tpu.vector_store %arg11[%96, %c0_30], %95 {strides = array<i32>} : memref<16x32xf32, #tpu.memory_space<vmem>>, vector<2x32xf32>,
    %c4_i32 = arith.constant 4 : i32
    %c2_i32_31 = arith.constant 2 : i32
    %98 = arith.muli %c4_i32, %c2_i32_31 : i32
    %99 = arith.index_cast %98 : i32 to index
    %c0_32 = arith.constant 0 : index
    %100 = vector.load %arg10[%99, %c0_32] : memref<16x128xf32, #tpu.memory_space<vmem>>, vector<2x128xf32>
    %cst_33 = arith.constant dense<0.000000e+00> : vector<2x128xf32>
    %101 = tpu.matmul %95, %7, %cst_33 {dimension_numbers = #tpu.dot_dimension_numbers<[1], [0], [0], [1], [0, 0, 1, 1], [], []>} : vector<2x32xf32>, vector<32x128xf32>, vector<2x128xf32> -> vector<2x128xf32>
    %102 = arith.addf %100, %101 : vector<2x128xf32>
    %103 = arith.negf %102 : vector<2x128xf32>
    %104 = math.exp %103 : vector<2x128xf32>
    %cst_34 = arith.constant 1.000000e+00 : f32
    %105 = vector.broadcast %cst_34 : f32 to vector<2x128xf32>
    %106 = arith.addf %105, %104 : vector<2x128xf32>
    %107 = arith.divf %105, %106 : vector<2x128xf32>
    %108 = math.tanh %102 : vector<2x128xf32>
    %109 = vector.extract_strided_slice %107 {offsets = [0, 0], sizes = [2, 32], strides = [1, 1]} : vector<2x128xf32> to vector<2x32xf32>
    %110 = vector.extract_strided_slice %107 {offsets = [0, 32], sizes = [2, 32], strides = [1, 1]} : vector<2x128xf32> to vector<2x32xf32>
    %111 = vector.extract_strided_slice %108 {offsets = [0, 64], sizes = [2, 32], strides = [1, 1]} : vector<2x128xf32> to vector<2x32xf32>
    %112 = vector.extract_strided_slice %107 {offsets = [0, 96], sizes = [2, 32], strides = [1, 1]} : vector<2x128xf32> to vector<2x32xf32>
    %113 = arith.mulf %110, %93 : vector<2x32xf32>
    %114 = arith.mulf %109, %111 : vector<2x32xf32>
    %115 = arith.addf %113, %114 : vector<2x32xf32>
    %116 = math.tanh %115 : vector<2x32xf32>
    %117 = arith.mulf %112, %116 : vector<2x32xf32>
    %118 = arith.index_cast %98 : i32 to index
    %c0_35 = arith.constant 0 : index
    %119 = vector.load %arg11[%118, %c0_35] : memref<16x32xf32, #tpu.memory_space<vmem>>, vector<2x32xf32>
    tpu.vector_store %arg11[%118, %c0_35], %117 {strides = array<i32>} : memref<16x32xf32, #tpu.memory_space<vmem>>, vector<2x32xf32>,
    %c5_i32 = arith.constant 5 : i32
    %c2_i32_36 = arith.constant 2 : i32
    %120 = arith.muli %c5_i32, %c2_i32_36 : i32
    %121 = arith.index_cast %120 : i32 to index
    %c0_37 = arith.constant 0 : index
    %122 = vector.load %arg10[%121, %c0_37] : memref<16x128xf32, #tpu.memory_space<vmem>>, vector<2x128xf32>
    %cst_38 = arith.constant dense<0.000000e+00> : vector<2x128xf32>
    %123 = tpu.matmul %117, %7, %cst_38 {dimension_numbers = #tpu.dot_dimension_numbers<[1], [0], [0], [1], [0, 0, 1, 1], [], []>} : vector<2x32xf32>, vector<32x128xf32>, vector<2x128xf32> -> vector<2x128xf32>
    %124 = arith.addf %122, %123 : vector<2x128xf32>
    %125 = arith.negf %124 : vector<2x128xf32>
    %126 = math.exp %125 : vector<2x128xf32>
    %cst_39 = arith.constant 1.000000e+00 : f32
    %127 = vector.broadcast %cst_39 : f32 to vector<2x128xf32>
    %128 = arith.addf %127, %126 : vector<2x128xf32>
    %129 = arith.divf %127, %128 : vector<2x128xf32>
    %130 = math.tanh %124 : vector<2x128xf32>
    %131 = vector.extract_strided_slice %129 {offsets = [0, 0], sizes = [2, 32], strides = [1, 1]} : vector<2x128xf32> to vector<2x32xf32>
    %132 = vector.extract_strided_slice %129 {offsets = [0, 32], sizes = [2, 32], strides = [1, 1]} : vector<2x128xf32> to vector<2x32xf32>
    %133 = vector.extract_strided_slice %130 {offsets = [0, 64], sizes = [2, 32], strides = [1, 1]} : vector<2x128xf32> to vector<2x32xf32>
    %134 = vector.extract_strided_slice %129 {offsets = [0, 96], sizes = [2, 32], strides = [1, 1]} : vector<2x128xf32> to vector<2x32xf32>
    %135 = arith.mulf %132, %115 : vector<2x32xf32>
    %136 = arith.mulf %131, %133 : vector<2x32xf32>
    %137 = arith.addf %135, %136 : vector<2x32xf32>
    %138 = math.tanh %137 : vector<2x32xf32>
    %139 = arith.mulf %134, %138 : vector<2x32xf32>
    %140 = arith.index_cast %120 : i32 to index
    %c0_40 = arith.constant 0 : index
    %141 = vector.load %arg11[%140, %c0_40] : memref<16x32xf32, #tpu.memory_space<vmem>>, vector<2x32xf32>
    tpu.vector_store %arg11[%140, %c0_40], %139 {strides = array<i32>} : memref<16x32xf32, #tpu.memory_space<vmem>>, vector<2x32xf32>,
    %c6_i32 = arith.constant 6 : i32
    %c2_i32_41 = arith.constant 2 : i32
    %142 = arith.muli %c6_i32, %c2_i32_41 : i32
    %143 = arith.index_cast %142 : i32 to index
    %c0_42 = arith.constant 0 : index
    %144 = vector.load %arg10[%143, %c0_42] : memref<16x128xf32, #tpu.memory_space<vmem>>, vector<2x128xf32>
    %cst_43 = arith.constant dense<0.000000e+00> : vector<2x128xf32>
    %145 = tpu.matmul %139, %7, %cst_43 {dimension_numbers = #tpu.dot_dimension_numbers<[1], [0], [0], [1], [0, 0, 1, 1], [], []>} : vector<2x32xf32>, vector<32x128xf32>, vector<2x128xf32> -> vector<2x128xf32>
    %146 = arith.addf %144, %145 : vector<2x128xf32>
    %147 = arith.negf %146 : vector<2x128xf32>
    %148 = math.exp %147 : vector<2x128xf32>
    %cst_44 = arith.constant 1.000000e+00 : f32
    %149 = vector.broadcast %cst_44 : f32 to vector<2x128xf32>
    %150 = arith.addf %149, %148 : vector<2x128xf32>
    %151 = arith.divf %149, %150 : vector<2x128xf32>
    %152 = math.tanh %146 : vector<2x128xf32>
    %153 = vector.extract_strided_slice %151 {offsets = [0, 0], sizes = [2, 32], strides = [1, 1]} : vector<2x128xf32> to vector<2x32xf32>
    %154 = vector.extract_strided_slice %151 {offsets = [0, 32], sizes = [2, 32], strides = [1, 1]} : vector<2x128xf32> to vector<2x32xf32>
    %155 = vector.extract_strided_slice %152 {offsets = [0, 64], sizes = [2, 32], strides = [1, 1]} : vector<2x128xf32> to vector<2x32xf32>
    %156 = vector.extract_strided_slice %151 {offsets = [0, 96], sizes = [2, 32], strides = [1, 1]} : vector<2x128xf32> to vector<2x32xf32>
    %157 = arith.mulf %154, %137 : vector<2x32xf32>
    %158 = arith.mulf %153, %155 : vector<2x32xf32>
    %159 = arith.addf %157, %158 : vector<2x32xf32>
    %160 = math.tanh %159 : vector<2x32xf32>
    %161 = arith.mulf %156, %160 : vector<2x32xf32>
    %162 = arith.index_cast %142 : i32 to index
    %c0_45 = arith.constant 0 : index
    %163 = vector.load %arg11[%162, %c0_45] : memref<16x32xf32, #tpu.memory_space<vmem>>, vector<2x32xf32>
    tpu.vector_store %arg11[%162, %c0_45], %161 {strides = array<i32>} : memref<16x32xf32, #tpu.memory_space<vmem>>, vector<2x32xf32>,
    %c7_i32 = arith.constant 7 : i32
    %c2_i32_46 = arith.constant 2 : i32
    %164 = arith.muli %c7_i32, %c2_i32_46 : i32
    %165 = arith.index_cast %164 : i32 to index
    %c0_47 = arith.constant 0 : index
    %166 = vector.load %arg10[%165, %c0_47] : memref<16x128xf32, #tpu.memory_space<vmem>>, vector<2x128xf32>
    %cst_48 = arith.constant dense<0.000000e+00> : vector<2x128xf32>
    %167 = tpu.matmul %161, %7, %cst_48 {dimension_numbers = #tpu.dot_dimension_numbers<[1], [0], [0], [1], [0, 0, 1, 1], [], []>} : vector<2x32xf32>, vector<32x128xf32>, vector<2x128xf32> -> vector<2x128xf32>
    %168 = arith.addf %166, %167 : vector<2x128xf32>
    %169 = arith.negf %168 : vector<2x128xf32>
    %170 = math.exp %169 : vector<2x128xf32>
    %cst_49 = arith.constant 1.000000e+00 : f32
    %171 = vector.broadcast %cst_49 : f32 to vector<2x128xf32>
    %172 = arith.addf %171, %170 : vector<2x128xf32>
    %173 = arith.divf %171, %172 : vector<2x128xf32>
    %174 = math.tanh %168 : vector<2x128xf32>
    %175 = vector.extract_strided_slice %173 {offsets = [0, 0], sizes = [2, 32], strides = [1, 1]} : vector<2x128xf32> to vector<2x32xf32>
    %176 = vector.extract_strided_slice %173 {offsets = [0, 32], sizes = [2, 32], strides = [1, 1]} : vector<2x128xf32> to vector<2x32xf32>
    %177 = vector.extract_strided_slice %174 {offsets = [0, 64], sizes = [2, 32], strides = [1, 1]} : vector<2x128xf32> to vector<2x32xf32>
    %178 = vector.extract_strided_slice %173 {offsets = [0, 96], sizes = [2, 32], strides = [1, 1]} : vector<2x128xf32> to vector<2x32xf32>
    %179 = arith.mulf %176, %159 : vector<2x32xf32>
    %180 = arith.mulf %175, %177 : vector<2x32xf32>
    %181 = arith.addf %179, %180 : vector<2x32xf32>
    %182 = math.tanh %181 : vector<2x32xf32>
    %183 = arith.mulf %178, %182 : vector<2x32xf32>
    %184 = arith.index_cast %164 : i32 to index
    %c0_50 = arith.constant 0 : index
    %185 = vector.load %arg11[%184, %c0_50] : memref<16x32xf32, #tpu.memory_space<vmem>>, vector<2x32xf32>
    tpu.vector_store %arg11[%184, %c0_50], %183 {strides = array<i32>} : memref<16x32xf32, #tpu.memory_space<vmem>>, vector<2x32xf32>,
    %c8_i32 = arith.constant 8 : i32
    %c0_51 = arith.constant 0 : index
    %c0_52 = arith.constant 0 : index
    %186 = vector.load %arg8[%c0_51, %c0_52] : memref<2x32xf32, #tpu.memory_space<vmem>>, vector<2x32xf32>
    tpu.vector_store %arg8[%c0_51, %c0_52], %183 {strides = array<i32>} : memref<2x32xf32, #tpu.memory_space<vmem>>, vector<2x32xf32>,
    %c0_53 = arith.constant 0 : index
    %c0_54 = arith.constant 0 : index
    %187 = vector.load %arg9[%c0_53, %c0_54] : memref<2x32xf32, #tpu.memory_space<vmem>>, vector<2x32xf32>
    tpu.vector_store %arg9[%c0_53, %c0_54], %181 {strides = array<i32>} : memref<2x32xf32, #tpu.memory_space<vmem>>, vector<2x32xf32>,
    %c0_55 = arith.constant 0 : index
    %c0_56 = arith.constant 0 : index
    %188 = vector.load %arg11[%c0_55, %c0_56] : memref<16x32xf32, #tpu.memory_space<vmem>>, vector<16x32xf32>
    %c0_57 = arith.constant 0 : index
    %c0_58 = arith.constant 0 : index
    %189 = vector.load %arg5[%c0_57, %c0_58] : memref<32x64xf32, #tpu.memory_space<vmem>>, vector<32x64xf32>
    %cst_59 = arith.constant dense<0.000000e+00> : vector<16x64xf32>
    %190 = tpu.matmul %188, %189, %cst_59 {dimension_numbers = #tpu.dot_dimension_numbers<[1], [0], [0], [1], [0, 0, 1, 1], [], []>} : vector<16x32xf32>, vector<32x64xf32>, vector<16x64xf32> -> vector<16x64xf32>
    %c0_60 = arith.constant 0 : index
    %c0_61 = arith.constant 0 : index
    %191 = vector.load %arg6[%c0_60, %c0_61] : memref<1x64xf32, #tpu.memory_space<vmem>>, vector<1x64xf32>
    %192 = vector.broadcast %191 : vector<1x64xf32> to vector<16x64xf32>
    %193 = arith.addf %190, %192 : vector<16x64xf32>
    %c0_62 = arith.constant 0 : index
    %c0_63 = arith.constant 0 : index
    %194 = vector.load %arg7[%c0_62, %c0_63] : memref<16x64xf32, #tpu.memory_space<vmem>>, vector<16x64xf32>
    tpu.vector_store %arg7[%c0_62, %c0_63], %193 {strides = array<i32>} : memref<16x64xf32, #tpu.memory_space<vmem>>, vector<16x64xf32>,
    return
  }
  func.func @transform_0(%arg0: i32) -> (i32, i32) {
    %c0_i32 = arith.constant 0 : i32
    %c0_i32_0 = arith.constant 0 : i32
    %c0_i32_1 = arith.constant 0 : i32
    return %c0_i32, %c0_i32_0 : i32, i32
  }
  func.func @transform_1(%arg0: i32) -> (i32, i32) {
    %c0_i32 = arith.constant 0 : i32
    %c0_i32_0 = arith.constant 0 : i32
    %c0_i32_1 = arith.constant 0 : i32
    return %c0_i32, %c0_i32_0 : i32, i32
  }
  func.func @transform_2(%arg0: i32) -> (i32, i32) {
    %c0_i32 = arith.constant 0 : i32
    %c0_i32_0 = arith.constant 0 : i32
    %c0_i32_1 = arith.constant 0 : i32
    return %c0_i32, %c0_i32_0 : i32, i32
  }
  func.func @transform_3(%arg0: i32) -> (i32, i32) {
    %c0_i32 = arith.constant 0 : i32
    %c0_i32_0 = arith.constant 0 : i32
    %c0_i32_1 = arith.constant 0 : i32
    return %c0_i32, %c0_i32_0 : i32, i32
  }
  func.func @transform_4(%arg0: i32) -> (i32, i32) {
    %c0_i32 = arith.constant 0 : i32
    %c0_i32_0 = arith.constant 0 : i32
    %c0_i32_1 = arith.constant 0 : i32
    return %c0_i32, %c0_i32_0 : i32, i32
  }
  func.func @transform_5(%arg0: i32) -> (i32, i32) {
    %c0_i32 = arith.constant 0 : i32
    %c0_i32_0 = arith.constant 0 : i32
    %c0_i32_1 = arith.constant 0 : i32
    return %c0_i32, %c0_i32_0 : i32, i32
  }
  func.func @transform_6(%arg0: i32) -> (i32, i32) {
    %c0_i32 = arith.constant 0 : i32
    %c0_i32_0 = arith.constant 0 : i32
    %c0_i32_1 = arith.constant 0 : i32
    return %c0_i32, %c0_i32_0 : i32, i32
  }
  func.func @transform_7(%arg0: i32) -> (i32, i32) {
    %c0_i32 = arith.constant 0 : i32
    %c0_i32_0 = arith.constant 0 : i32
    %c0_i32_1 = arith.constant 0 : i32
    return %c0_i32, %c0_i32_0 : i32, i32
  }
  func.func @transform_8(%arg0: i32) -> (i32, i32) {
    %c0_i32 = arith.constant 0 : i32
    %c0_i32_0 = arith.constant 0 : i32
    %c0_i32_1 = arith.constant 0 : i32
    return %c0_i32, %c0_i32_0 : i32, i32
  }
}

</mosaic_0001>

<bundles_post_ra>
// kernel: tpu_custom_call.1
= control target key start
LH: loop header
LB: loop body
LE: loop exit
PB: predicated region body
PF: predicated region fallthrough
CT: control target
= control target key end

     0   :  { %14 = vsyncpa [#allocation5], 0  ;;  %s1806_s0 = inlined_call_operand.hbm [shape: f32[16,16], index: 0, kind: input, shape index: {}]   ;;  %s1807_s1 = inlined_call_operand.hbm [shape: f32[16,128], index: 1, kind: input, shape index: {}]   ;;  %s1808_s2 = inlined_call_operand.hbm [shape: f32[32,128], index: 2, kind: input, shape index: {}]   ;;  %s1809_s3 = inlined_call_operand.vmem [shape: f32[1,128], index: 3, kind: input, shape index: {}]   ;;  %s1810_s4 = inlined_call_operand.hbm [shape: f32[32,64], index: 4, kind: input, shape index: {}]   ;;  %s1811_s5 = inlined_call_operand.vmem [shape: f32[1,64], index: 5, kind: input, shape index: {}]   ;;  %s1812_s6 = inlined_call_operand.hbm [shape: f32[16,64], index: 6, kind: output, shape index: {0}]   ;;  %s1813_s7 = inlined_call_operand.hbm [shape: f32[2,32], index: 7, kind: output, shape index: {1}]   ;;  %s1814_s8 = inlined_call_operand.hbm [shape: f32[2,32], index: 8, kind: output, shape index: {2}]  }
   0x1   :  { %15 = vsyncpa [#allocation8], 0 }
   0x2   :  { %16 = vsyncpa [#allocation11], 0 }
   0x3   :  { %17 = vsyncpa [#allocation6], 0 }
   0x4   :  { %18 = vsyncpa [#allocation14], 0  ;;  %s1563_s27 = smov [#allocation7]   ;;  %s1564_s29 = smov [#allocation4]  }
   0x5   :  { %s36_s28 = sshll.u32 %s1563_s27, 4  ;;  %s24_s30 = sshll.u32 %s1564_s29, 4  ;;  %s37_s28 = int_to_ptr.vmem [resolvable:$true] %s36_s28  ;;  %s25_s30 = int_to_ptr.vmem [resolvable:$true] %s24_s30 }
   0x6   :  { %s1421_s9 = scalar_lea.vmem %s37_s28, 256  ;;  %p1426_p1 = scmp.lt.s32.totalorder %s37_s28, %s37_s28 }
   0x7   :  { %p1422_p0 = scmp.ne.s32.totalorder %s37_s28, %s1421_s9  ;;  %p1427_p2 = scmp.lt.s32.totalorder %s1421_s9, %s1421_s9 }
   0x9   :  { %p1428_p3 = por %p1427_p2, %p1426_p1 }
   0xb   :  { %p1429_p4 = pnand %p1428_p3, %p1422_p0 }
   0xd   :  { %1432 = shalt.err (!%p1429_p4)
}
   0xe   :  { %s1565_s10 = smov 128   ;;  %s1566_s11 = smov 8  }
   0xf   :  { %42 = dma.hbm_to_vmem [thread:$0]  %s1807_s1, 256, %s37_s28, [#allocation8], %s1565_s10, %s1565_s10, %s1566_s11  }
  0x10   :  { %s1441_s14 = scalar_lea.vmem %s25_s30, 256  ;;  %p1446_p6 = scmp.lt.s32.totalorder %s25_s30, %s25_s30 }
  0x11   :  { %p1442_p5 = scmp.ne.s32.totalorder %s25_s30, %s1441_s14  ;;  %p1447_p7 = scmp.lt.s32.totalorder %s1441_s14, %s1441_s14 }
  0x13   :  { %p1448_p8 = por %p1447_p7, %p1446_p6 }
  0x15   :  { %p1449_p9 = pnand %p1448_p8, %p1442_p5 }
  0x17   :  { %1452 = shalt.err (!%p1449_p9)
}
  0x18   :  { %30 = dma.hbm_to_vmem [thread:$0]  %s1806_s0, 256, %s25_s30, [#allocation5], %s1565_s10, %s1565_s10, %s1566_s11  }
  0x19   :  { %s1567_s17 = smov [#allocation9]   ;;  %s1568_s19 = smov [#allocation10]  }
  0x1a   :  { %s48_s18 = sshll.u32 %s1567_s17, 4  ;;  %s62_s20 = sshll.u32 %s1568_s19, 4  ;;  %s49_s18 = int_to_ptr.vmem [resolvable:$true] %s48_s18  ;;  %s63_s20 = int_to_ptr.vmem [resolvable:$true] %s62_s20 }
  0x1b   :  { %s1461_s1 = scalar_lea.vmem %s49_s18, 512  ;;  %p1466_p11 = scmp.lt.s32.totalorder %s49_s18, %s49_s18 }
  0x1c   :  { %p1462_p10 = scmp.ne.s32.totalorder %s49_s18, %s1461_s1  ;;  %p1467_p12 = scmp.lt.s32.totalorder %s1461_s1, %s1461_s1 }
  0x1e   :  { %p1468_p13 = por %p1467_p12, %p1466_p11 }
  0x20   :  { %p1469_p0 = pnand %p1468_p13, %p1462_p10 }
  0x22   :  { %1472 = shalt.err (!%p1469_p0)
}
  0x23   :  { %54 = dma.hbm_to_vmem [thread:$0]  %s1808_s2, 512, %s49_s18, [#allocation8], %s1565_s10, %s1565_s10, %s1566_s11  }
  0x24   :  { %s1481_s0 = scalar_lea.vmem %s63_s20, 512  ;;  %p1486_p2 = scmp.lt.s32.totalorder %s63_s20, %s63_s20 }
  0x25   :  { %p1482_p1 = scmp.ne.s32.totalorder %s63_s20, %s1481_s0  ;;  %p1487_p3 = scmp.lt.s32.totalorder %s1481_s0, %s1481_s0 }
  0x27   :  { %p1488_p4 = por %p1487_p3, %p1486_p2 }
  0x29   :  { %p1489_p5 = pnand %p1488_p4, %p1482_p1 }
  0x2b   :  { %1492 = shalt.err (!%p1489_p5)
}
  0x2c   :  { %68 = dma.hbm_to_vmem [thread:$0]  %s1810_s4, 512, %s63_s20, [#allocation11], %s1565_s10, %s1565_s10, %s1566_s11  }
  0x2d   :  { %1553 = dma.done.wait [#allocation5], 256  }
  0x2e   :  { %1554 = vsyncadd [#allocation5], 4294967040 }
  0x2f   :  { %1555 = dma.done.wait [#allocation8], 768  }
  0x30   :  { %1556 = vsyncadd [#allocation8], 4294966528 }
  0x31   :  { %1557 = dma.done.wait [#allocation11], 512  }
  0x32   :  { %1558 = vsyncadd [#allocation11], 4294966784  ;;  %v1569_v0 = vmov 0.0   ;;  %vm1570_vm0 = vmmov 0   ;;  %vm94_vm1 = vcmask 130048   ;;  %v86_v1 = vld [vmem:[#allocation7 + $0x8] sm:$0xff] }
  0x33   :  { %1236 = vmatprep.subr.mxu1 %v1569_v0  ;;  %1244 = vmatprep.mubr.msk.f32.mxu1 %vm1570_vm0, %v1569_v0  ;;  %v85_v2 = vld [vmem:[#allocation7] sm:$0xff]  ;;  %v83_v3 = vld [vmem:[#allocation4] sm:$0xff]  ;;  %v1650_v4 = vld [vmem:[#allocation9 + $0x18] sm:$0xff]  ;;  %s1571_s25 = smov 64   ;;  %vm286_vm2 = vcmask 254976   ;;  %vm183_vm3 = vcmask 261120  }
  0x34   :  { %1229 = vmatprep.subr.mxu0 %v86_v1  ;;  %1233 = vmatprep.mubr.msk.f32.mxu0 %vm94_vm1, %v83_v3  ;;  %v1652_v5 = vld [vmem:[#allocation9 + $0x10] sm:$0xff]  ;;  %v84_v6 = vld [vmem:[#allocation4 + $0x8] sm:$0xff]  ;;  %v1661_v8 = vld [vmem:[#allocation9] sm:$0xff]  ;;  %s1573_s26 = smov 96   ;;  %s1574_s27 = smov [#allocation13]  }
  0x35   :  { %1230 = vmatpush3.msra.mxu0 %v86_v1  ;;  %1237 = vmatpush3.msra.mxu1 %v1650_v4  ;;  %v1656_v7 = vld [vmem:[#allocation9 + $0x8] sm:$0xff]  ;;  %v1158_v9 = vld [vmem:[%s1809_s3] ss:$0 sm:$0xff]  ;;  %s1572_s3 = smov 32   ;;  %s1130_s28 = sshll.u32 %s1574_s27, 4  ;;  %s1131_s28 = int_to_ptr.vmem [resolvable:$true] %s1130_s28 }
  0x36   :  { %1231 = vmatprep.subr.mxu0 %v85_v2  ;;  %1238 = vmatprep.subr.mxu1 %v1569_v0  ;;  %s1493_s29 = scalar_lea.vmem %s1131_s28, 32  ;;  %p1498_p7 = scmp.lt.s32.totalorder %s1131_s28, %s1131_s28 }
  0x37   :  { %1232 = vmatpush3.msra.mxu0 %v85_v2  ;;  %1239 = vmatpush3.msra.mxu1 %v1652_v5  ;;  %p1494_p6 = scmp.ne.s32.totalorder %s1131_s28, %s1493_s29  ;;  %p1499_p8 = scmp.lt.s32.totalorder %s1493_s29, %s1493_s29 }
  0x38   :  { %1234 = vmatmul.mubr.msk.f32.vlgmr.msra.gmra.mxu0 %vm94_vm1, %v84_v6  ;;  %1240 = vmatprep.subr.mxu1 %v1569_v0 }
  0x39   :  { %1241 = vmatpush3.msra.mxu1 %v1656_v7  ;;  %1247 = vmatprep.subr.mxu0 %v1569_v0  ;;  %p1500_p9 = por %p1499_p8, %p1498_p7 }
  0x3a   :  { %1242 = vmatprep.subr.mxu1 %v1569_v0  ;;  %1248 = vmatpush3.msra.mxu0 %v1650_v4 }
  0x3b   :  { %1243 = vmatpush3.msra.mxu1 %v1661_v8  ;;  %1249 = vmatprep.subr.mxu0 %v1569_v0  ;;  %p1501_p10 = pnand %p1500_p9, %p1494_p6 }
  0x3c   :  { %1245 = vmatmul.mubr.f32.vlgmr.msra.gmra.mxu1 %v1569_v0  ;;  %1250 = vmatpush3.msra.mxu0 %v1652_v5 }
  0x3d   :  { %1251 = vmatprep.subr.mxu0 %v1569_v0  ;;  %1255 = vmatprep.mubr.msk.f32.mxu0 %vm1570_vm0, %v1569_v0 }
  0x3e   :  { %1252 = vmatpush3.msra.mxu0 %v1656_v7  ;;  %1258 = vmatprep.subr.mxu1 %v1569_v0 }
  0x3f   :  { %1253 = vmatprep.subr.mxu0 %v1569_v0  ;;  %1259 = vmatpush3.msra.mxu1 %v1650_v4 }
  0x40   :  { %1254 = vmatpush3.msra.mxu0 %v1661_v8  ;;  %1260 = vmatprep.subr.mxu1 %v1569_v0 }
  0x41   :  { %1261 = vmatpush3.msra.mxu1 %v1652_v5  ;;  %1266 = vmatprep.mubr.msk.f32.mxu1 %vm1570_vm0, %v1569_v0 }
  0x42   :  { %1262 = vmatprep.subr.mxu1 %v1569_v0  ;;  %1269 = vmatprep.subr.mxu0 %v1569_v0 }
  0x43   :  { %1263 = vmatpush3.msra.mxu1 %v1656_v7 }
  0x44   :  { %1264 = vmatprep.subr.mxu1 %v1569_v0 }
  0x45   :  { %1265 = vmatpush3.msra.mxu1 %v1661_v8 }
  0x46   :  { %1280 = vmatprep.subr.mxu1 %v1569_v0 }
  0xf8   :  { %v1235_v10 = vpop.f32.mrf.mxu0 }
  0xf9   :  { %v173_v11 = vadd.f32 %v1235_v10, %v1158_v9 }
  0xfa   :  { %v167_v12 = vpop.f32.mrf.mxu0 }
  0xfb   :  { %177 = vst [vmem:[#allocation2 + $0x8] sm:$0xff] %v173_v11  ;;  %v168_v13 = vadd.f32 %v1158_v9, %v167_v12 }
  0xfc   :  { %v253_v14 = vpop.f32.mrf.mxu1 }
  0xfd   :  { %176 = vst [vmem:[#allocation2] sm:$0xff] %v168_v13 }
  0xfe   :  { %v1246_v15 = vpop.f32.mrf.mxu1 }
 0x104   :  { %v182_v16 = vld [vmem:[#allocation2] sm:$0x3]  ;;  %v288_v32 = vld [vmem:[#allocation2 + $0x2] sm:$0x3]  ;;  %v391_v50 = vld [vmem:[#allocation2 + $0x4] sm:$0x3] }
 0x105   :  { %v257_v17 = vadd.f32 %v253_v14, %v182_v16  ;;  %v494_v9 = vld [vmem:[#allocation2 + $0x6] sm:$0x3] }
 0x107   :  { %1349 = vtanh.f32 %v257_v17  ;;  %v1161_v19 = vmul.f32 -1.442695, %v257_v17 }
 0x109   :  { %1351 = vpow2.f32 %v1161_v19 }
 0x114   :  { %v1350_v18 = vpop.eup %1349 }
 0x115   :  { %267 = vrot.lane.b32.xlu0 %v1350_v18, %s1571_s25 }
 0x116   :  { %v1352_v20 = vpop.eup %1351 }
 0x117   :  { %v261_v21 = vadd.f32 1.0, %v1352_v20 }
 0x119   :  { %1353 = vrcp.f32 %v261_v21 }
 0x126   :  { %v1354_v22 = vpop.eup %1353 }
 0x127   :  { %v265_v25 = vmul.f32 0.0, %v1354_v22 }
 0x187   :  { %v268_v23 = vpop.permute.xlu0 %267 }
 0x188   :  { %v270_v24 = vmul.f32 %v1354_v22, %v268_v23 }
 0x18a   :  { %272 = vrot.lane.b32.xlu0 %v270_v24, %s1572_s3 }
 0x1fc   :  { %v273_v26 = vpop.permute.xlu0 %272 }
 0x1fd   :  { %v275_v27 = vadd.f32 %v273_v26, %v265_v25 }
 0x1ff   :  { %1355 = vtanh.f32 %v275_v27 }
 0x20c   :  { %v1356_v28 = vpop.eup %1355 }
 0x20d   :  { %278 = vrot.lane.b32.xlu1 %v1356_v28, %s1571_s25 }
 0x27f   :  { %v279_v29 = vpop.permute.xlu1 %278 }
 0x280   :  { %v281_v30 = vmul.f32 %v1354_v22, %v279_v29 }
 0x282   :  { %283 = vrot.lane.b32.xlu1 %v281_v30, %s1572_s3 }
 0x2f4   :  { %v284_v31 = vpop.permute.xlu1 %283 }
 0x2f5   :  { %287 = vst.msk [vmem:[#allocation3] sm:$0x3] %vm286_vm2, %v284_v31  ;;  %1256 = vmatmul.mubr.msk.f32.vlgmr.msra.gmra.mxu0 %vm183_vm3, %v284_v31 }
 0x2f6   :  { %1270 = vmatpush3.msra.mxu0 %v1650_v4  ;;  %1277 = vmatprep.mubr.msk.f32.mxu0 %vm1570_vm0, %v1569_v0 }
 0x2f7   :  { %1271 = vmatprep.subr.mxu0 %v1569_v0 }
 0x2f8   :  { %1272 = vmatpush3.msra.mxu0 %v1652_v5 }
 0x2f9   :  { %1273 = vmatprep.subr.mxu0 %v1569_v0 }
 0x2fa   :  { %1274 = vmatpush3.msra.mxu0 %v1656_v7 }
 0x2fb   :  { %1275 = vmatprep.subr.mxu0 %v1569_v0 }
 0x2fc   :  { %1276 = vmatpush3.msra.mxu0 %v1661_v8 }
 0x2fd   :  { %1291 = vmatprep.subr.mxu0 %v1569_v0 }
 0x3b5   :  { %v357_v33 = vpop.f32.mrf.mxu0 }
 0x3b6   :  { %v361_v34 = vadd.f32 %v357_v33, %v288_v32 }
 0x3b7   :  { %v1257_v35 = vpop.f32.mrf.mxu0 }
 0x3b8   :  { %1357 = vtanh.f32 %v361_v34  ;;  %v1163_v37 = vmul.f32 -1.442695, %v361_v34 }
 0x3ba   :  { %1359 = vpow2.f32 %v1163_v37 }
 0x3c5   :  { %v1358_v36 = vpop.eup %1357 }
 0x3c6   :  { %371 = vrot.lane.b32.xlu0 %v1358_v36, %s1571_s25 }
 0x3c7   :  { %v1360_v38 = vpop.eup %1359 }
 0x3c8   :  { %v365_v39 = vadd.f32 1.0, %v1360_v38 }
 0x3ca   :  { %1361 = vrcp.f32 %v365_v39 }
 0x3d7   :  { %v1362_v40 = vpop.eup %1361 }
 0x3d8   :  { %v369_v43 = vmul.f32 %v1362_v40, %v275_v27  ;;  %v597_v27 = vld [vmem:[#allocation2 + $0x8] sm:$0x3] }
 0x438   :  { %v372_v41 = vpop.permute.xlu0 %371 }
 0x439   :  { %v374_v42 = vmul.f32 %v1362_v40, %v372_v41 }
 0x43b   :  { %376 = vrot.lane.b32.xlu1 %v374_v42, %s1572_s3 }
 0x4ad   :  { %v377_v44 = vpop.permute.xlu1 %376 }
 0x4ae   :  { %v379_v45 = vadd.f32 %v377_v44, %v369_v43 }
 0x4b0   :  { %1363 = vtanh.f32 %v379_v45 }
 0x4bd   :  { %v1364_v46 = vpop.eup %1363 }
 0x4be   :  { %382 = vrot.lane.b32.xlu0 %v1364_v46, %s1571_s25 }
 0x530   :  { %v383_v47 = vpop.permute.xlu0 %382 }
 0x531   :  { %v385_v48 = vmul.f32 %v1362_v40, %v383_v47 }
 0x533   :  { %387 = vrot.lane.b32.xlu1 %v385_v48, %s1572_s3 }
 0x5a5   :  { %v388_v49 = vpop.permute.xlu1 %387 }
 0x5a6   :  { %390 = vst.msk [vmem:[#allocation3 + $0x2] sm:$0x3] %vm286_vm2, %v388_v49  ;;  %1267 = vmatmul.mubr.msk.f32.vlgmr.msra.gmra.mxu1 %vm183_vm3, %v388_v49 }
 0x5a7   :  { %1281 = vmatpush3.msra.mxu1 %v1650_v4  ;;  %1288 = vmatprep.mubr.msk.f32.mxu1 %vm1570_vm0, %v1569_v0 }
 0x5a8   :  { %1282 = vmatprep.subr.mxu1 %v1569_v0 }
 0x5a9   :  { %1283 = vmatpush3.msra.mxu1 %v1652_v5 }
 0x5aa   :  { %1284 = vmatprep.subr.mxu1 %v1569_v0 }
 0x5ab   :  { %1285 = vmatpush3.msra.mxu1 %v1656_v7 }
 0x5ac   :  { %1286 = vmatprep.subr.mxu1 %v1569_v0 }
 0x5ad   :  { %1287 = vmatpush3.msra.mxu1 %v1661_v8 }
 0x5ae   :  { %1302 = vmatprep.subr.mxu1 %v1569_v0 }
 0x666   :  { %v460_v51 = vpop.f32.mrf.mxu1 }
 0x667   :  { %v464_v52 = vadd.f32 %v460_v51, %v391_v50 }
 0x668   :  { %v1268_v53 = vpop.f32.mrf.mxu1 }
 0x669   :  { %1365 = vtanh.f32 %v464_v52  ;;  %v1165_v55 = vmul.f32 -1.442695, %v464_v52 }
 0x66b   :  { %1367 = vpow2.f32 %v1165_v55 }
 0x676   :  { %v1366_v54 = vpop.eup %1365 }
 0x677   :  { %474 = vrot.lane.b32.xlu0 %v1366_v54, %s1571_s25 }
 0x678   :  { %v1368_v56 = vpop.eup %1367 }
 0x679   :  { %v468_v57 = vadd.f32 1.0, %v1368_v56 }
 0x67b   :  { %1369 = vrcp.f32 %v468_v57 }
 0x688   :  { %v1370_v58 = vpop.eup %1369 }
 0x689   :  { %v472_v61 = vmul.f32 %v1370_v58, %v379_v45  ;;  %v700_v45 = vld [vmem:[#allocation2 + $0xa] sm:$0x3] }
 0x6e9   :  { %v475_v59 = vpop.permute.xlu0 %474 }
 0x6ea   :  { %v477_v60 = vmul.f32 %v1370_v58, %v475_v59  ;;  %v803_v59 = vld [vmem:[#allocation2 + $0xc] sm:$0x3] }
 0x6ec   :  { %479 = vrot.lane.b32.xlu1 %v477_v60, %s1572_s3 }
 0x75e   :  { %v480_v62 = vpop.permute.xlu1 %479 }
 0x75f   :  { %v482_v63 = vadd.f32 %v480_v62, %v472_v61 }
 0x761   :  { %1371 = vtanh.f32 %v482_v63 }
 0x76e   :  { %v1372_v1 = vpop.eup %1371 }
 0x76f   :  { %485 = vrot.lane.b32.xlu0 %v1372_v1, %s1571_s25 }
 0x7e1   :  { %v486_v2 = vpop.permute.xlu0 %485 }
 0x7e2   :  { %v488_v3 = vmul.f32 %v1370_v58, %v486_v2 }
 0x7e4   :  { %490 = vrot.lane.b32.xlu1 %v488_v3, %s1572_s3 }
 0x856   :  { %v491_v6 = vpop.permute.xlu1 %490 }
 0x857   :  { %493 = vst.msk [vmem:[#allocation3 + $0x4] sm:$0x3] %vm286_vm2, %v491_v6  ;;  %1278 = vmatmul.mubr.msk.f32.vlgmr.msra.gmra.mxu0 %vm183_vm3, %v491_v6 }
 0x858   :  { %1292 = vmatpush3.msra.mxu0 %v1650_v4  ;;  %1299 = vmatprep.mubr.msk.f32.mxu0 %vm1570_vm0, %v1569_v0 }
 0x859   :  { %1293 = vmatprep.subr.mxu0 %v1569_v0 }
 0x85a   :  { %1294 = vmatpush3.msra.mxu0 %v1652_v5 }
 0x85b   :  { %1295 = vmatprep.subr.mxu0 %v1569_v0 }
 0x85c   :  { %1296 = vmatpush3.msra.mxu0 %v1656_v7 }
 0x85d   :  { %1297 = vmatprep.subr.mxu0 %v1569_v0 }
 0x85e   :  { %1298 = vmatpush3.msra.mxu0 %v1661_v8 }
 0x85f   :  { %1313 = vmatprep.subr.mxu0 %v1569_v0 }
 0x917   :  { %v563_v10 = vpop.f32.mrf.mxu0 }
 0x918   :  { %v567_v11 = vadd.f32 %v563_v10, %v494_v9 }
 0x919   :  { %v1279_v12 = vpop.f32.mrf.mxu0 }
 0x91a   :  { %1373 = vtanh.f32 %v567_v11  ;;  %v1167_v14 = vmul.f32 -1.442695, %v567_v11 }
 0x91c   :  { %1375 = vpow2.f32 %v1167_v14 }
 0x927   :  { %v1374_v13 = vpop.eup %1373 }
 0x928   :  { %577 = vrot.lane.b32.xlu0 %v1374_v13, %s1571_s25 }
 0x929   :  { %v1376_v15 = vpop.eup %1375 }
 0x92a   :  { %v571_v16 = vadd.f32 1.0, %v1376_v15 }
 0x92c   :  { %1377 = vrcp.f32 %v571_v16 }
 0x939   :  { %v1378_v17 = vpop.eup %1377 }
 0x93a   :  { %v575_v20 = vmul.f32 %v1378_v17, %v482_v63 }
 0x99a   :  { %v578_v18 = vpop.permute.xlu0 %577 }
 0x99b   :  { %v580_v19 = vmul.f32 %v1378_v17, %v578_v18  ;;  %v906_v18 = vld [vmem:[#allocation2 + $0xe] sm:$0x3] }
 0x99d   :  { %582 = vrot.lane.b32.xlu1 %v580_v19, %s1572_s3 }
 0xa0f   :  { %v583_v21 = vpop.permute.xlu1 %582 }
 0xa10   :  { %v585_v22 = vadd.f32 %v583_v21, %v575_v20 }
 0xa12   :  { %1379 = vtanh.f32 %v585_v22 }
 0xa1f   :  { %v1380_v23 = vpop.eup %1379 }
 0xa20   :  { %588 = vrot.lane.b32.xlu0 %v1380_v23, %s1571_s25 }
 0xa92   :  { %v589_v24 = vpop.permute.xlu0 %588 }
 0xa93   :  { %v591_v25 = vmul.f32 %v1378_v17, %v589_v24 }
 0xa95   :  { %593 = vrot.lane.b32.xlu1 %v591_v25, %s1572_s3 }
 0xb07   :  { %v594_v26 = vpop.permute.xlu1 %593 }
 0xb08   :  { %596 = vst.msk [vmem:[#allocation3 + $0x6] sm:$0x3] %vm286_vm2, %v594_v26  ;;  %1289 = vmatmul.mubr.msk.f32.vlgmr.msra.gmra.mxu1 %vm183_vm3, %v594_v26 }
 0xb09   :  { %1303 = vmatpush3.msra.mxu1 %v1650_v4  ;;  %1310 = vmatprep.mubr.msk.f32.mxu1 %vm1570_vm0, %v1569_v0 }
 0xb0a   :  { %1304 = vmatprep.subr.mxu1 %v1569_v0 }
 0xb0b   :  { %1305 = vmatpush3.msra.mxu1 %v1652_v5 }
 0xb0c   :  { %1306 = vmatprep.subr.mxu1 %v1569_v0 }
 0xb0d   :  { %1307 = vmatpush3.msra.mxu1 %v1656_v7 }
 0xb0e   :  { %1308 = vmatprep.subr.mxu1 %v1569_v0 }
 0xb0f   :  { %1309 = vmatpush3.msra.mxu1 %v1661_v8  ;;  %v1015_v58 = vld [vmem:[#allocation3] sm:$0xff] }
 0xbc8   :  { %v666_v28 = vpop.f32.mrf.mxu1 }
 0xbc9   :  { %v670_v29 = vadd.f32 %v666_v28, %v597_v27 }
 0xbca   :  { %v1290_v30 = vpop.f32.mrf.mxu1 }
 0xbcb   :  { %1381 = vtanh.f32 %v670_v29  ;;  %v1169_v32 = vmul.f32 -1.442695, %v670_v29 }
 0xbcd   :  { %1383 = vpow2.f32 %v1169_v32 }
 0xbd8   :  { %v1382_v31 = vpop.eup %1381 }
 0xbd9   :  { %680 = vrot.lane.b32.xlu0 %v1382_v31, %s1571_s25 }
 0xbda   :  { %v1384_v33 = vpop.eup %1383 }
 0xbdb   :  { %v674_v34 = vadd.f32 1.0, %v1384_v33  ;;  %v1020_v33 = vld [vmem:[#allocation10 + $0x18] sm:$0xff] }
 0xbdc   :  { %1324 = vmatprep.subr.mxu1 %v1020_v33 }
 0xbdd   :  { %1385 = vrcp.f32 %v674_v34  ;;  %v1019_v34 = vld [vmem:[#allocation10 + $0x10] sm:$0xff] }
 0xbea   :  { %v1386_v35 = vpop.eup %1385 }
 0xbeb   :  { %v678_v38 = vmul.f32 %v1386_v35, %v585_v22 }
 0xc4b   :  { %v681_v36 = vpop.permute.xlu0 %680 }
 0xc4c   :  { %v683_v37 = vmul.f32 %v1386_v35, %v681_v36  ;;  %v1017_v36 = vld [vmem:[#allocation10] sm:$0xff] }
 0xc4e   :  { %685 = vrot.lane.b32.xlu1 %v683_v37, %s1572_s3 }
 0xcc0   :  { %v686_v39 = vpop.permute.xlu1 %685 }
 0xcc1   :  { %v688_v40 = vadd.f32 %v686_v39, %v678_v38 }
 0xcc3   :  { %1387 = vtanh.f32 %v688_v40 }
 0xcd0   :  { %v1388_v41 = vpop.eup %1387 }
 0xcd1   :  { %691 = vrot.lane.b32.xlu0 %v1388_v41, %s1571_s25 }
 0xd43   :  { %v692_v42 = vpop.permute.xlu0 %691 }
 0xd44   :  { %v694_v43 = vmul.f32 %v1386_v35, %v692_v42  ;;  %v1018_v35 = vld [vmem:[#allocation10 + $0x8] sm:$0xff] }
 0xd46   :  { %696 = vrot.lane.b32.xlu1 %v694_v43, %s1572_s3 }
 0xdb8   :  { %v697_v44 = vpop.permute.xlu1 %696 }
 0xdb9   :  { %699 = vst.msk [vmem:[#allocation3 + $0x8] sm:$0x3] %vm286_vm2, %v697_v44  ;;  %1300 = vmatmul.mubr.msk.f32.vlgmr.msra.gmra.mxu0 %vm183_vm3, %v697_v44 }
 0xdba   :  { %1314 = vmatpush3.msra.mxu0 %v1650_v4  ;;  %1321 = vmatprep.mubr.msk.f32.mxu0 %vm1570_vm0, %v1569_v0 }
 0xdbb   :  { %1315 = vmatprep.subr.mxu0 %v1569_v0 }
 0xdbc   :  { %1316 = vmatpush3.msra.mxu0 %v1652_v5 }
 0xdbd   :  { %1317 = vmatprep.subr.mxu0 %v1569_v0 }
 0xdbe   :  { %1318 = vmatpush3.msra.mxu0 %v1656_v7 }
 0xdbf   :  { %1319 = vmatprep.subr.mxu0 %v1569_v0 }
 0xdc0   :  { %1320 = vmatpush3.msra.mxu0 %v1661_v8 }
 0xe79   :  { %v769_v46 = vpop.f32.mrf.mxu0 }
 0xe7a   :  { %v773_v47 = vadd.f32 %v769_v46, %v700_v45 }
 0xe7b   :  { %v1301_v48 = vpop.f32.mrf.mxu0 }
 0xe7c   :  { %1389 = vtanh.f32 %v773_v47  ;;  %v1171_v49 = vmul.f32 -1.442695, %v773_v47 }
 0xe7e   :  { %1391 = vpow2.f32 %v1171_v49 }
 0xe89   :  { %v1390_v4 = vpop.eup %1389 }
 0xe8a   :  { %783 = vrot.lane.b32.xlu0 %v1390_v4, %s1571_s25 }
 0xe8b   :  { %v1392_v50 = vpop.eup %1391 }
 0xe8c   :  { %v777_v5 = vadd.f32 1.0, %v1392_v50 }
 0xe8e   :  { %1393 = vrcp.f32 %v777_v5 }
 0xe9b   :  { %v1394_v51 = vpop.eup %1393 }
 0xe9c   :  { %v781_v0 = vmul.f32 %v1394_v51, %v688_v40 }
 0xefc   :  { %v784_v52 = vpop.permute.xlu0 %783 }
 0xefd   :  { %v786_v7 = vmul.f32 %v1394_v51, %v784_v52 }
 0xeff   :  { %788 = vrot.lane.b32.xlu1 %v786_v7, %s1572_s3 }
 0xf71   :  { %v789_v8 = vpop.permute.xlu1 %788 }
 0xf72   :  { %v791_v53 = vadd.f32 %v789_v8, %v781_v0 }
 0xf74   :  { %1395 = vtanh.f32 %v791_v53 }
 0xf81   :  { %v1396_v54 = vpop.eup %1395 }
 0xf82   :  { %794 = vrot.lane.b32.xlu0 %v1396_v54, %s1571_s25 }
 0xff4   :  { %v795_v55 = vpop.permute.xlu0 %794 }
 0xff5   :  { %v797_v56 = vmul.f32 %v1394_v51, %v795_v55 }
 0xff7   :  { %799 = vrot.lane.b32.xlu1 %v797_v56, %s1572_s3 }
0x1069   :  { %v800_v57 = vpop.permute.xlu1 %799 }
0x106a   :  { %802 = vst.msk [vmem:[#allocation3 + $0xa] sm:$0x3] %vm286_vm2, %v800_v57  ;;  %1311 = vmatmul.mubr.msk.f32.vlgmr.msra.gmra.mxu1 %vm183_vm3, %v800_v57 }
0x106b   :  { %1332 = vmatprep.mubr.msk.f32.mxu1 %vm183_vm3, %v1015_v58  ;;  %1325 = vmatpush3.msra.mxu1 %v1020_v33 }
0x106c   :  { %1326 = vmatprep.subr.mxu1 %v1019_v34 }
0x106d   :  { %1327 = vmatpush3.msra.mxu1 %v1019_v34 }
0x106e   :  { %1328 = vmatprep.subr.mxu1 %v1018_v35 }
0x106f   :  { %1329 = vmatpush3.msra.mxu1 %v1018_v35 }
0x1070   :  { %1330 = vmatprep.subr.mxu1 %v1017_v36 }
0x1071   :  { %1331 = vmatpush3.msra.mxu1 %v1017_v36 }
0x112a   :  { %v872_v60 = vpop.f32.mrf.mxu1 }
0x112b   :  { %v876_v61 = vadd.f32 %v872_v60, %v803_v59 }
0x112c   :  { %v1312_v62 = vpop.f32.mrf.mxu1 }
0x112d   :  { %1397 = vtanh.f32 %v876_v61  ;;  %v1173_v1 = vmul.f32 -1.442695, %v876_v61 }
0x112f   :  { %1399 = vpow2.f32 %v1173_v1 }
0x113a   :  { %v1398_v63 = vpop.eup %1397 }
0x113b   :  { %886 = vrot.lane.b32.xlu0 %v1398_v63, %s1571_s25 }
0x113c   :  { %v1400_v2 = vpop.eup %1399 }
0x113d   :  { %v880_v3 = vadd.f32 1.0, %v1400_v2 }
0x113f   :  { %1401 = vrcp.f32 %v880_v3 }
0x114c   :  { %v1402_v6 = vpop.eup %1401 }
0x114d   :  { %v884_v11 = vmul.f32 %v1402_v6, %v791_v53 }
0x11ad   :  { %v887_v9 = vpop.permute.xlu0 %886 }
0x11ae   :  { %v889_v10 = vmul.f32 %v1402_v6, %v887_v9 }
0x11b0   :  { %891 = vrot.lane.b32.xlu1 %v889_v10, %s1572_s3 }
0x1222   :  { %v892_v12 = vpop.permute.xlu1 %891 }
0x1223   :  { %v894_v13 = vadd.f32 %v892_v12, %v884_v11 }
0x1225   :  { %1403 = vtanh.f32 %v894_v13 }
0x1232   :  { %v1404_v14 = vpop.eup %1403 }
0x1233   :  { %897 = vrot.lane.b32.xlu0 %v1404_v14, %s1571_s25 }
0x12a5   :  { %v898_v15 = vpop.permute.xlu0 %897 }
0x12a6   :  { %v900_v16 = vmul.f32 %v1402_v6, %v898_v15 }
0x12a8   :  { %902 = vrot.lane.b32.xlu1 %v900_v16, %s1572_s3 }
0x131a   :  { %v903_v17 = vpop.permute.xlu1 %902 }
0x131b   :  { %905 = vst.msk [vmem:[#allocation3 + $0xc] sm:$0x3] %vm286_vm2, %v903_v17  ;;  %1322 = vmatmul.mubr.msk.f32.vlgmr.msra.gmra.mxu0 %vm183_vm3, %v903_v17 }
0x13db   :  { %v975_v19 = vpop.f32.mrf.mxu0 }
0x13dc   :  { %v979_v20 = vadd.f32 %v975_v19, %v906_v18 }
0x13dd   :  { %v1323_v21 = vpop.f32.mrf.mxu0 }
0x13de   :  { %1405 = vtanh.f32 %v979_v20  ;;  %v1175_v23 = vmul.f32 -1.442695, %v979_v20 }
0x13e0   :  { %1407 = vpow2.f32 %v1175_v23 }
0x13eb   :  { %v1406_v22 = vpop.eup %1405 }
0x13ec   :  { %989 = vrot.lane.b32.xlu0 %v1406_v22, %s1571_s25 }
0x13ed   :  { %v1408_v24 = vpop.eup %1407 }
0x13ee   :  { %v983_v25 = vadd.f32 1.0, %v1408_v24 }
0x13f0   :  { %1409 = vrcp.f32 %v983_v25 }
0x13fd   :  { %v1410_v26 = vpop.eup %1409 }
0x13fe   :  { %v987_v29 = vmul.f32 %v1410_v26, %v894_v13 }
0x145e   :  { %v990_v27 = vpop.permute.xlu0 %989 }
0x145f   :  { %v992_v28 = vmul.f32 %v1410_v26, %v990_v27 }
0x1461   :  { %994 = vrot.lane.b32.xlu1 %v992_v28, %s1572_s3 }
0x14d3   :  { %v995_v30 = vpop.permute.xlu1 %994 }
0x14d4   :  { %v997_v31 = vadd.f32 %v995_v30, %v987_v29 }
0x14d6   :  { %1411 = vtanh.f32 %v997_v31 }
0x14e3   :  { %v1412_v32 = vpop.eup %1411 }
0x14e4   :  { %1000 = vrot.lane.b32.xlu0 %v1412_v32, %s1571_s25 }
0x14e8   :  { %1011 = vrot.lane.b32.xlu0 %v997_v31, %s1573_s26 }
0x1556   :  { %v1001_v37 = vpop.permute.xlu0 %1000 }
0x1557   :  { %v1003_v38 = vmul.f32 %v1410_v26, %v1001_v37 }
0x1559   :  { %1005 = vrot.lane.b32.xlu1 %v1003_v38, %s1572_s3 }
0x155a   :  { %v1012_v39 = vpop.permute.xlu0 %1011 }
0x155b   :  { %1014 = vst.msk [vmem:[#allocation15] sm:$0x3] %vm286_vm2, %v1012_v39 }
0x15cb   :  { %v1006_v40 = vpop.permute.xlu1 %1005 }
0x15cc   :  { %1008 = vst.msk [vmem:[#allocation3 + $0xe] sm:$0x3] %vm286_vm2, %v1006_v40  ;;  %1009 = vst.msk [vmem:[#allocation13] sm:$0x3] %vm286_vm2, %v1006_v40 }
0x15d3   :  { %v1016_v41 = vld [vmem:[#allocation3 + $0x8] sm:$0xff] }
0x15d4   :  { %1333 = vmatmul.mubr.msk.f32.vlgmr.msra.gmra.mxu1 %vm183_vm3, %v1016_v41 }
0x15d5   :  { %1504 = shalt.err (!%p1501_p10)
}
0x15d6   :  { %1133 = dma.vmem_to_hbm [thread:$0]  %s1131_s28, 32, %s1813_s7, [#allocation14]  }
0x15d7   :  { %s1575_s12 = smov [#allocation15]  }
0x15d8   :  { %s1140_s13 = sshll.u32 %s1575_s12, 4  ;;  %s1141_s13 = int_to_ptr.vmem [resolvable:$true] %s1140_s13 }
0x15d9   :  { %s1513_s14 = scalar_lea.vmem %s1141_s13, 32  ;;  %p1518_p12 = scmp.lt.s32.totalorder %s1141_s13, %s1141_s13 }
0x15da   :  { %p1514_p11 = scmp.ne.s32.totalorder %s1141_s13, %s1513_s14  ;;  %p1519_p13 = scmp.lt.s32.totalorder %s1513_s14, %s1513_s14 }
0x15dc   :  { %p1520_p0 = por %p1519_p13, %p1518_p12 }
0x15de   :  { %p1521_p1 = pnand %p1520_p0, %p1514_p11 }
0x15e0   :  { %1524 = shalt.err (!%p1521_p1)
}
0x15e1   :  { %1143 = dma.vmem_to_hbm [thread:$0]  %s1141_s13, 32, %s1814_s8, [#allocation14]   ;;  %v1176_v42 = vld [vmem:[%s1811_s5] ss:$0 sm:$0xff]  ;;  %vm1109_vm4 = vcmask 523264  }
0x15e2   :  { %s1576_s7 = smov [#allocation12]  }
0x15e3   :  { %s1117_s19 = sshll.u32 %s1576_s7, 4  ;;  %s1118_s19 = int_to_ptr.vmem [resolvable:$true] %s1117_s19 }
0x15e4   :  { %s1533_s20 = scalar_lea.vmem %s1118_s19, 256  ;;  %p1538_p3 = scmp.lt.s32.totalorder %s1118_s19, %s1118_s19 }
0x15e5   :  { %p1534_p2 = scmp.ne.s32.totalorder %s1118_s19, %s1533_s20  ;;  %p1539_p4 = scmp.lt.s32.totalorder %s1533_s20, %s1533_s20 }
0x15e7   :  { %p1540_p5 = por %p1539_p4, %p1538_p3 }
0x15e9   :  { %p1541_p6 = pnand %p1540_p5, %p1534_p2 }
0x1694   :  { %v1334_v43 = vpop.f32.mrf.mxu1 }
0x1695   :  { %v1106_v44 = vadd.f32 %v1334_v43, %v1176_v42 }
0x1696   :  { %v1100_v45 = vpop.f32.mrf.mxu1 }
0x1697   :  { %v1101_v46 = vadd.f32 %v1176_v42, %v1100_v45  ;;  %1111 = vst.msk [vmem:[#allocation12 + $0x8] sm:$0xff] %vm1109_vm4, %v1106_v44 }
0x1699   :  { %1110 = vst.msk [vmem:[#allocation12] sm:$0xff] %vm1109_vm4, %v1101_v46 }
0x169a   :  { %1544 = shalt.err (!%p1541_p6)
}
0x169b   :  { %1123 = dma.vmem_to_hbm [thread:$0]  %s1118_s19, 256, %s1812_s6, [#allocation6], %s1565_s10, %s1565_s10, %s1566_s11  }
0x169c   :  { %1559 = dma.done.wait [#allocation6], 256  }
0x169d   :  { %1560 = vsyncadd [#allocation6], 4294967040 }
0x169e   :  { %1561 = dma.done.wait [#allocation14], 64  }
0x169f   :  { %1562 = vsyncadd [#allocation14], 4294967232 }
0x16a0   :  { %1153 = vsyncpa [#allocation5], 1 }
0x16a1   :  { %1154 = vsyncpa [#allocation8], 1 }
0x16a2   :  { %1155 = vsyncpa [#allocation11], 1 }
0x16a3   :  { %1156 = vsyncpa [#allocation6], 1 }
0x16a4   :  { %1157 = vsyncpa [#allocation14], 1 }

</bundles_post_ra>
